<compile_context>
chip_gen: v6e
topology: v6e:2x2x1
jax: 0.10.0
libtpu: 0.0.40
codegen_flags: <defaults>
</compile_context>

<pallas_src>
import functools

import jax
import jax.numpy as jnp
from jax.experimental import pallas as pl
from jax.experimental.pallas import tpu as pltpu


# --------------------------------------------------------------------------
# Fused single-pass kernel: pool -> fc1 -> SiLU -> fc2 -> sigmoid -> scale.
# --------------------------------------------------------------------------
def _se_fused_kernel(x_ref, w1_ref, b1_ref, w2_ref, b2_ref, o_ref, *, inv_hw):
    # x_ref / o_ref: [TB, C, HW]   w1_ref: [C, S]  b1_ref: [1, S]
    # w2_ref: [S, C]               b2_ref: [1, C]
    x = x_ref[...]  # input dtype; no full-block fp32 duplicate

    # adaptive_avg_pool2d(input, 1): lane-axis sum in fp32, scaled by 1/HW.
    pooled = jnp.sum(x.astype(jnp.float32), axis=-1) * inv_hw            # [TB, C]

    # fc1 (1x1 conv == dense over channels) + SiLU, fp32 (tiny).
    h = jnp.dot(pooled, w1_ref[...], preferred_element_type=jnp.float32)
    h = h + b1_ref[...]                                                  # [TB, S]
    h = h * jax.nn.sigmoid(h)                                            # SiLU

    # fc2 + sigmoid.
    s = jnp.dot(h, w2_ref[...], preferred_element_type=jnp.float32)
    s = jax.nn.sigmoid(s + b2_ref[...])                                  # [TB, C]

    # Big elementwise scale stays in the input dtype.
    o_ref[...] = (x * s.astype(x.dtype)[:, :, None]).astype(o_ref.dtype)


# --------------------------------------------------------------------------
# Two-phase fallback, phase 1: HW-tiled pooling + gate computation.
# --------------------------------------------------------------------------
def _se_pool_gate_kernel(x_ref, w1_ref, b1_ref, w2_ref, b2_ref, s_ref,
                         acc_ref, *, hw, thw, inv_hw):
    # x_ref: [1, C, THW]  s_ref: [1, 1, C]  acc_ref: [1, C] fp32 scratch
    hi = pl.program_id(1)

    @pl.when(hi == 0)
    def _():
        acc_ref[...] = jnp.zeros_like(acc_ref)

    x = x_ref[...].astype(jnp.float32)                                   # [1, C, THW]
    # Mask lanes past HW: the final partial tile's OOB lanes hold stale data.
    lane = jax.lax.broadcasted_iota(jnp.int32, x.shape, 2)
    x = jnp.where(hi * thw + lane < hw, x, 0.0)
    acc_ref[...] += jnp.sum(x, axis=-1)                                  # [1, C]

    @pl.when(hi == pl.num_programs(1) - 1)
    def _():
        pooled = acc_ref[...] * inv_hw                                   # [1, C]
        h = jnp.dot(pooled, w1_ref[...], preferred_element_type=jnp.float32)
        h = h + b1_ref[...]
        h = h * jax.nn.sigmoid(h)                                        # SiLU
        s = jnp.dot(h, w2_ref[...], preferred_element_type=jnp.float32)
        s = jax.nn.sigmoid(s + b2_ref[...])                              # [1, C]
        s_ref[...] = s[:, None, :]


# --------------------------------------------------------------------------
# Two-phase fallback, phase 2: elementwise scale (fully parallel grid).
# --------------------------------------------------------------------------
def _se_scale_kernel(x_ref, s_ref, o_ref):
    # x_ref / o_ref: [1, C, THW]   s_ref: [1, 1, C]
    x = x_ref[...]
    s = s_ref[...][:, 0, :, None]                                        # [1, C, 1]
    o_ref[...] = (x * s.astype(x.dtype)).astype(o_ref.dtype)


def squeeze_excitation(x_nchw, w1, b1, w2, b2, *, force_two_phase=False,
                       hw_block=None):
    """x_nchw: [B, C, H, W]; w1: [S, C] (fc1 1x1-conv weight squeezed); b1: [S];
    w2: [C, S]; b2: [C].  Returns [B, C, H, W]."""
    B, C, H, W = x_nchw.shape
    S = w1.shape[0]
    HW = H * W
    x = x_nchw.reshape(B, C, HW)

    # Pre-transpose + pre-cast weights (tiny, fetched once, stay resident).
    w1t = jnp.transpose(w1).astype(jnp.float32)        # [C, S]
    w2t = jnp.transpose(w2).astype(jnp.float32)        # [S, C]
    b1r = b1.reshape(1, S).astype(jnp.float32)
    b2r = b2.reshape(1, C).astype(jnp.float32)

    itemsize = jnp.dtype(x_nchw.dtype).itemsize
    per_image_bytes = C * HW * itemsize

    # Generation-aware VMEM budget: never request full physical VMEM.
    try:
        vmem_cap = int(pltpu.get_tpu_info().vmem_capacity_bytes)
    except Exception:
        vmem_cap = 64 * 1024 * 1024
    safe_cap = (vmem_cap * 3) // 4                     # headroom for Mosaic scratch

    weight_bytes = (2 * C * S + C + S) * 4
    cost = pl.CostEstimate(
        flops=4 * B * C * S + 2 * B * C * HW,
        transcendentals=B * (S + C),
        bytes_accessed=2 * B * C * HW * itemsize + weight_bytes,
    )

    two_phase_threshold = min(10 * 1024 * 1024, safe_cap // 6)
    use_two_phase = force_two_phase or per_image_bytes > two_phase_threshold

    if not use_two_phase:
        # ----- fused single-pass path -----------------------------------
        target_block = 2 * 1024 * 1024                 # ~1-2 MiB per block
        TB = max(1, min(B, target_block // max(1, per_image_bytes)))
        nb = pl.cdiv(B, TB)
        block_bytes = TB * per_image_bytes
        vmem_limit = int(min(safe_cap, max(16 * 1024 * 1024, 6 * block_bytes)))

        kernel = functools.partial(_se_fused_kernel, inv_hw=1.0 / HW)
        out = pl.pallas_call(
            kernel,
            out_shape=jax.ShapeDtypeStruct((B, C, HW), x_nchw.dtype),
            grid=(nb,),
            in_specs=[
                pl.BlockSpec((TB, C, HW), lambda b: (b, 0, 0)),   # x
                pl.BlockSpec((C, S), lambda b: (0, 0)),           # w1t (resident)
                pl.BlockSpec((1, S), lambda b: (0, 0)),           # b1  (resident)
                pl.BlockSpec((S, C), lambda b: (0, 0)),           # w2t (resident)
                pl.BlockSpec((1, C), lambda b: (0, 0)),           # b2  (resident)
            ],
            out_specs=pl.BlockSpec((TB, C, HW), lambda b: (b, 0, 0)),
            compiler_params=pltpu.CompilerParams(
                dimension_semantics=("parallel",),
                vmem_limit_bytes=vmem_limit,
            ),
            cost_estimate=cost,
        )(x, w1t, b1r, w2t, b2r)
        return out.reshape(B, C, H, W)

    # ----- two-phase HW-tiled path (large C*HW per image) ---------------
    if hw_block is None:
        target_tile = 2 * 1024 * 1024
        thw = (target_tile // max(1, C * itemsize)) // 128 * 128
        thw = max(128, min(thw, pl.cdiv(HW, 128) * 128))
    else:
        thw = max(128, (hw_block // 128) * 128)
    nhw = pl.cdiv(HW, thw)
    tile_bytes = C * thw * itemsize
    vmem_limit = int(min(safe_cap, max(16 * 1024 * 1024, 6 * tile_bytes)))

    pool_kernel = functools.partial(
        _se_pool_gate_kernel, hw=HW, thw=thw, inv_hw=1.0 / HW)

    # Phase 1: per-image pooled gate s = sigmoid(fc2(silu(fc1(mean(x))))).
    s_gate = pl.pallas_call(
        pool_kernel,
        out_shape=jax.ShapeDtypeStruct((B, 1, C), jnp.float32),
        grid=(B, nhw),
        in_specs=[
            pl.BlockSpec((1, C, thw), lambda b, h: (b, 0, h)),    # x tile
            pl.BlockSpec((C, S), lambda b, h: (0, 0)),
            pl.BlockSpec((1, S), lambda b, h: (0, 0)),
            pl.BlockSpec((S, C), lambda b, h: (0, 0)),
            pl.BlockSpec((1, C), lambda b, h: (0, 0)),
        ],
        out_specs=pl.BlockSpec((1, 1, C), lambda b, h: (b, 0, 0)),
        scratch_shapes=[pltpu.VMEM((1, C), jnp.float32)],
        compiler_params=pltpu.CompilerParams(
            dimension_semantics=("parallel", "arbitrary"),
            vmem_limit_bytes=vmem_limit,
        ),
    )(x, w1t, b1r, w2t, b2r)

    # Phase 2: elementwise scale, fully parallel over (batch, HW tiles).
    out = pl.pallas_call(
        _se_scale_kernel,
        out_shape=jax.ShapeDtypeStruct((B, C, HW), x_nchw.dtype),
        grid=(B, nhw),
        in_specs=[
            pl.BlockSpec((1, C, thw), lambda b, h: (b, 0, h)),    # x tile
            pl.BlockSpec((1, 1, C), lambda b, h: (b, 0, 0)),      # gate
        ],
        out_specs=pl.BlockSpec((1, C, thw), lambda b, h: (b, 0, h)),
        compiler_params=pltpu.CompilerParams(
            dimension_semantics=("parallel", "parallel"),
            vmem_limit_bytes=vmem_limit,
        ),
        cost_estimate=cost,
    )(x, s_gate)
    return out.reshape(B, C, H, W)


def reference_se(x_nchw, w1, b1, w2, b2):
    x = x_nchw.astype(jnp.float32)
    pooled = jnp.mean(x, axis=(2, 3))                       # [B, C]
    h = pooled @ w1.T + b1                                  # [B, S]
    h = h * jax.nn.sigmoid(h)
    s = jax.nn.sigmoid(h @ w2.T + b2)                       # [B, C]
    return (x * s[:, :, None, None]).astype(x_nchw.dtype)


if __name__ == "__main__":
    key = jax.random.PRNGKey(0)
    kx, k1, k2, k3, k4, kx2 = jax.random.split(key, 6)

    # Shapes consistent with SqueezeExcitation(input_channels=4, squeeze_channels=2).
    B, C, H, W = 2, 4, 16, 16
    S = 2

    x = jax.random.normal(kx, (B, C, H, W), dtype=jnp.float32)
    w1 = jax.random.normal(k1, (S, C), dtype=jnp.float32) * 0.5   # fc1 weight [S,C,1,1] squeezed
    b1 = jax.random.normal(k2, (S,), dtype=jnp.float32) * 0.1
    w2 = jax.random.normal(k3, (C, S), dtype=jnp.float32) * 0.5   # fc2 weight [C,S,1,1] squeezed
    b2 = jax.random.normal(k4, (C,), dtype=jnp.float32) * 0.1

    # 1) Fused path (batched images per grid step, unpadded HW).
    out = jax.block_until_ready(squeeze_excitation(x, w1, b1, w2, b2))
    ref = reference_se(x, w1, b1, w2, b2)
    assert out.shape == (B, C, H, W)
    assert jnp.allclose(out, ref, atol=1e-5, rtol=1e-5), "mismatch (fused)"

    # 2) Non-multiple-of-128 spatial (7x7 -> HW=49): masked final lane group.
    x2 = jax.random.normal(kx2, (B, C, 7, 7), dtype=jnp.float32)
    out2 = jax.block_until_ready(squeeze_excitation(x2, w1, b1, w2, b2))
    ref2 = reference_se(x2, w1, b1, w2, b2)
    assert out2.shape == (B, C, 7, 7)
    assert jnp.allclose(out2, ref2, atol=1e-5, rtol=1e-5), "mismatch (odd HW)"

    # 3) Force the two-phase HW-tiled fallback (multi-tile accumulation).
    out3 = jax.block_until_ready(
        squeeze_excitation(x, w1, b1, w2, b2, force_two_phase=True, hw_block=128))
    assert jnp.allclose(out3, ref, atol=1e-5, rtol=1e-5), "mismatch (two-phase)"

    # 4) Two-phase with a partial HW tile (HW=49 < 128).
    out4 = jax.block_until_ready(
        squeeze_excitation(x2, w1, b1, w2, b2, force_two_phase=True, hw_block=128))
    assert jnp.allclose(out4, ref2, atol=1e-5, rtol=1e-5), "mismatch (two-phase, partial)"

    print("KERNEL_OK")
</pallas_src>

<mosaic_0001>
module attributes {stable_mosaic.version = 11 : i64} {
  func.func @_se_fused_kernel(%arg0: i32, %arg1: memref<2x4x256xf32, #tpu.memory_space<vmem>>, %arg2: memref<4x2xf32, #tpu.memory_space<vmem>>, %arg3: memref<1x2xf32, #tpu.memory_space<vmem>>, %arg4: memref<2x4xf32, #tpu.memory_space<vmem>>, %arg5: memref<1x4xf32, #tpu.memory_space<vmem>>, %arg6: memref<2x4x256xf32, #tpu.memory_space<vmem>>) attributes {dimension_semantics = [#tpu.dimension_semantics<parallel>], iteration_bounds = array<i64: 1>, scalar_prefetch = 0 : i64, scratch_operands = 0 : i64, tpu.core_type = #tpu.core_type<tc>, window_params = [{transform_indices = @transform_0, window_bounds = array<i64: 2, 4, 256>}, {pipeline_mode = #tpu.pipeline_mode<synchronous>, transform_indices = @transform_1, window_bounds = array<i64: 4, 2>}, {pipeline_mode = #tpu.pipeline_mode<synchronous>, transform_indices = @transform_2, window_bounds = array<i64: 1, 2>}, {pipeline_mode = #tpu.pipeline_mode<synchronous>, transform_indices = @transform_3, window_bounds = array<i64: 2, 4>}, {pipeline_mode = #tpu.pipeline_mode<synchronous>, transform_indices = @transform_4, window_bounds = array<i64: 1, 4>}, {transform_indices = @transform_5, window_bounds = array<i64: 2, 4, 256>}]} {
    %c0 = arith.constant 0 : index
    %c0_0 = arith.constant 0 : index
    %c0_1 = arith.constant 0 : index
    %0 = vector.load %arg1[%c0, %c0_0, %c0_1] : memref<2x4x256xf32, #tpu.memory_space<vmem>>, vector<2x4x256xf32>
    %cst = arith.constant dense<0.000000e+00> : vector<2x4xf32>
    %1 = vector.multi_reduction <add>, %0, %cst [2] : vector<2x4x256xf32> to vector<2x4xf32>
    %cst_2 = arith.constant 3.906250e-03 : f32
    %2 = vector.broadcast %cst_2 : f32 to vector<2x4xf32>
    %3 = arith.mulf %1, %2 : vector<2x4xf32>
    %c0_3 = arith.constant 0 : index
    %c0_4 = arith.constant 0 : index
    %4 = vector.load %arg2[%c0_3, %c0_4] : memref<4x2xf32, #tpu.memory_space<vmem>>, vector<4x2xf32>
    %cst_5 = arith.constant dense<0.000000e+00> : vector<2x2xf32>
    %5 = tpu.matmul %3, %4, %cst_5 {dimension_numbers = #tpu.dot_dimension_numbers<[1], [0], [0], [1], [0, 0, 1, 1], [], []>} : vector<2x4xf32>, vector<4x2xf32>, vector<2x2xf32> -> vector<2x2xf32>
    %c0_6 = arith.constant 0 : index
    %c0_7 = arith.constant 0 : index
    %6 = vector.load %arg3[%c0_6, %c0_7] : memref<1x2xf32, #tpu.memory_space<vmem>>, vector<1x2xf32>
    %7 = vector.broadcast %6 : vector<1x2xf32> to vector<2x2xf32>
    %8 = arith.addf %5, %7 : vector<2x2xf32>
    %9 = arith.negf %8 : vector<2x2xf32>
    %10 = math.exp %9 : vector<2x2xf32>
    %cst_8 = arith.constant 1.000000e+00 : f32
    %11 = vector.broadcast %cst_8 : f32 to vector<2x2xf32>
    %12 = arith.addf %11, %10 : vector<2x2xf32>
    %13 = arith.divf %11, %12 : vector<2x2xf32>
    %14 = arith.mulf %8, %13 : vector<2x2xf32>
    %c0_9 = arith.constant 0 : index
    %c0_10 = arith.constant 0 : index
    %15 = vector.load %arg4[%c0_9, %c0_10] : memref<2x4xf32, #tpu.memory_space<vmem>>, vector<2x4xf32>
    %cst_11 = arith.constant dense<0.000000e+00> : vector<2x4xf32>
    %16 = tpu.matmul %14, %15, %cst_11 {dimension_numbers = #tpu.dot_dimension_numbers<[1], [0], [0], [1], [0, 0, 1, 1], [], []>} : vector<2x2xf32>, vector<2x4xf32>, vector<2x4xf32> -> vector<2x4xf32>
    %c0_12 = arith.constant 0 : index
    %c0_13 = arith.constant 0 : index
    %17 = vector.load %arg5[%c0_12, %c0_13] : memref<1x4xf32, #tpu.memory_space<vmem>>, vector<1x4xf32>
    %18 = vector.broadcast %17 : vector<1x4xf32> to vector<2x4xf32>
    %19 = arith.addf %16, %18 : vector<2x4xf32>
    %20 = arith.negf %19 : vector<2x4xf32>
    %21 = math.exp %20 : vector<2x4xf32>
    %cst_14 = arith.constant 1.000000e+00 : f32
    %22 = vector.broadcast %cst_14 : f32 to vector<2x4xf32>
    %23 = arith.addf %22, %21 : vector<2x4xf32>
    %24 = arith.divf %22, %23 : vector<2x4xf32>
    %25 = vector.shape_cast %24 : vector<2x4xf32> to vector<2x4x1xf32>
    %26 = vector.broadcast %25 : vector<2x4x1xf32> to vector<2x4x256xf32>
    %27 = arith.mulf %0, %26 : vector<2x4x256xf32>
    %c0_15 = arith.constant 0 : index
    %c0_16 = arith.constant 0 : index
    %c0_17 = arith.constant 0 : index
    %28 = vector.load %arg6[%c0_15, %c0_16, %c0_17] : memref<2x4x256xf32, #tpu.memory_space<vmem>>, vector<2x4x256xf32>
    tpu.vector_store %arg6[%c0_15, %c0_16, %c0_17], %27 {strides = array<i32>} : memref<2x4x256xf32, #tpu.memory_space<vmem>>, vector<2x4x256xf32>,
    return
  }
  func.func @transform_0(%arg0: i32) -> (i32, i32, i32) {
    %c0_i32 = arith.constant 0 : i32
    %c0_i32_0 = arith.constant 0 : i32
    %c0_i32_1 = arith.constant 0 : i32
    return %arg0, %c0_i32, %c0_i32_0 : i32, i32, i32
  }
  func.func @transform_1(%arg0: i32) -> (i32, i32) {
    %c0_i32 = arith.constant 0 : i32
    %c0_i32_0 = arith.constant 0 : i32
    %c0_i32_1 = arith.constant 0 : i32
    return %c0_i32, %c0_i32_0 : i32, i32
  }
  func.func @transform_2(%arg0: i32) -> (i32, i32) {
    %c0_i32 = arith.constant 0 : i32
    %c0_i32_0 = arith.constant 0 : i32
    %c0_i32_1 = arith.constant 0 : i32
    return %c0_i32, %c0_i32_0 : i32, i32
  }
  func.func @transform_3(%arg0: i32) -> (i32, i32) {
    %c0_i32 = arith.constant 0 : i32
    %c0_i32_0 = arith.constant 0 : i32
    %c0_i32_1 = arith.constant 0 : i32
    return %c0_i32, %c0_i32_0 : i32, i32
  }
  func.func @transform_4(%arg0: i32) -> (i32, i32) {
    %c0_i32 = arith.constant 0 : i32
    %c0_i32_0 = arith.constant 0 : i32
    %c0_i32_1 = arith.constant 0 : i32
    return %c0_i32, %c0_i32_0 : i32, i32
  }
  func.func @transform_5(%arg0: i32) -> (i32, i32, i32) {
    %c0_i32 = arith.constant 0 : i32
    %c0_i32_0 = arith.constant 0 : i32
    %c0_i32_1 = arith.constant 0 : i32
    return %arg0, %c0_i32, %c0_i32_0 : i32, i32, i32
  }
}

</mosaic_0001>

<bundles_post_ra>
// kernel: tpu_custom_call.1
= control target key start
LH: loop header
LB: loop body
LE: loop exit
PB: predicated region body
PF: predicated region fallthrough
CT: control target
= control target key end

     0   :  { %10 = vsyncpa [#allocation3], 0  ;;  %s467_s0 = inlined_call_operand.hbm [shape: f32[2,4,256], index: 0, kind: input, shape index: {}]   ;;  %s468_s1 = inlined_call_operand.vmem [shape: f32[4,2], index: 1, kind: input, shape index: {}]   ;;  %s469_s2 = inlined_call_operand.vmem [shape: f32[1,2], index: 2, kind: input, shape index: {}]   ;;  %s470_s3 = inlined_call_operand.vmem [shape: f32[2,4], index: 3, kind: input, shape index: {}]   ;;  %s471_s4 = inlined_call_operand.vmem [shape: f32[1,4], index: 4, kind: input, shape index: {}]   ;;  %s472_s5 = inlined_call_operand.hbm [shape: f32[2,4,256], index: 5, kind: output, shape index: {}]  }
   0x1   :  { %11 = vsyncpa [#allocation4], 0  ;;  %s389_s18 = smov [#allocation2]  }
   0x2   :  { %s17_s19 = sshll.u32 %s389_s18, 4  ;;  %s18_s19 = int_to_ptr.vmem [resolvable:$true] %s17_s19 }
   0x3   :  { %s353_s20 = scalar_lea.vmem %s18_s19, 256  ;;  %p358_p1 = scmp.lt.s32.totalorder %s18_s19, %s18_s19 }
   0x4   :  { %p354_p0 = scmp.ne.s32.totalorder %s18_s19, %s353_s20  ;;  %p359_p2 = scmp.lt.s32.totalorder %s353_s20, %s353_s20 }
   0x6   :  { %p360_p3 = por %p359_p2, %p358_p1 }
   0x8   :  { %p361_p4 = pnand %p360_p3, %p354_p0 }
   0xa   :  { %364 = shalt.err (!%p361_p4)
}
   0xb   :  { %s390_s21 = smov 128   ;;  %s391_s22 = smov 8  }
   0xc   :  { %23 = dma.hbm_to_vmem [thread:$0]  %s467_s0, 256, %s18_s19, [#allocation3], %s390_s21, %s390_s21, %s391_s22  }
   0xd   :  { %385 = dma.done.wait [#allocation3], 256  }
   0xe   :  { %386 = vsyncadd [#allocation3], 4294967040  ;;  %vm43_vm0 = vcmask 1043456   ;;  %v432_v0 = vld [vmem:[#allocation2] sm:$0xff]  ;;  %v434_v1 = vld [vmem:[#allocation2 + $0x8] sm:$0xff]  ;;  %v392_v11 = vmov 0.0   ;;  %v66_v12 = vlaneseq }
   0xf   :  { %v39_v2 = vcombine.high %v432_v0, %v432_v0  ;;  %v44_v3 = vsel %vm43_vm0, %v432_v0, 0.0  ;;  %v40_v4 = vcombine.high %v434_v1, %v434_v1  ;;  %v49_v6 = vsel %vm43_vm0, %v434_v1, 0.0  ;;  %v56_v10 = vld [vmem:[%s468_s1] sm:$0xf]  ;;  %318 = vmatprep.subr.mxu0 %v392_v11  ;;  %323 = vmatprep.subr.mxu1 %v392_v11 }
  0x10   :  { %vm393_vm1 = vmmov 0   ;;  %319 = vmatpush3.msk.msra.mxu0 %vm43_vm0, %v56_v10  ;;  %v67_v13 = vand.u32 127, %v66_v12  ;;  %v69_v14 = vshrl.u32 %v66_v12, 7  ;;  %vm76_vm2 = vcmask 1041409   ;;  %v161_v23 = vld [vmem:[%s470_s3] sm:$0x3] }
  0x11   :  { %v45_v5 = vsel %vm43_vm0, %v39_v2, 0.0  ;;  %v50_v7 = vsel %vm43_vm0, %v40_v4, 0.0  ;;  %320 = vmatprep.mubr.msk.f32.mxu0 %vm393_vm1, %v392_v11  ;;  %325 = vmatprep.mubr.msk.f32.mxu1 %vm393_vm1, %v392_v11  ;;  %vm78_vm3 = vcmask 31744   ;;  %vm173_vm4 = vcmask 1041408   ;;  %v306_v24 = vld [vmem:[%s469_s2] ss:$0 sm:$0xff] }
  0x12   :  { %v46_v8 = vadd.f32 %v45_v5, %v44_v3  ;;  %v51_v9 = vadd.f32 %v50_v7, %v49_v6  ;;  %v70_v16 = vsub.s32 %v67_v13, %v69_v14  ;;  %324 = vmatpush3.msk.msra.mxu1 %vm173_vm4, %v161_v23  ;;  %vm169_vm5 = vcmask 15360   ;;  %v310_v33 = vld [vmem:[%s471_s4] ss:$0 sm:$0xff]  ;;  %s395_s2 = smov [#allocation5]  }
  0x13   :  { %v255_v40 = vsub.s32 0, %v69_v14  ;;  %v262_v43 = vsub.s32 1, %v69_v14  ;;  %v394_v45 = vmov 839922192   ;;  %s294_s4 = sshll.u32 %s395_s2, 4  ;;  %s295_s4 = int_to_ptr.vmem [resolvable:$true] %s294_s4 }
  0x14   :  { %47 = vadd.xlane.f32.xlu0 %v46_v8  ;;  %v270_v46 = vunpack.c.l.s4 %v394_v45  ;;  %s365_s30 = scalar_lea.vmem %s295_s4, 256  ;;  %p370_p6 = scmp.lt.s32.totalorder %s295_s4, %s295_s4 }
  0x15   :  { %p366_p5 = scmp.ne.s32.totalorder %s295_s4, %s365_s30  ;;  %p371_p7 = scmp.lt.s32.totalorder %s365_s30, %s365_s30 }
  0x16   :  { %v271_v47 = vunpack.c.0.s8 %v270_v46 }
  0x17   :  { %p372_p8 = por %p371_p7, %p370_p6 }
  0x18   :  { %52 = vadd.xlane.f32.xlu0 %v51_v9  ;;  %v274_v48 = vsub.s32 %v271_v47, %v69_v14 }
  0x19   :  { %p373_p9 = pnand %p372_p8, %p366_p5 }
  0x9d   :  { %v48_v15 = vpop.xlane.xlu0 %47 }
  0x9e   :  { %v54_v17 = vmul.f32 0.00390625, %v48_v15 }
  0xa0   :  { %v71_v20 = vrot.slane %v54_v17, %v70_v16 }
  0xa1   :  { %v53_v18 = vpop.xlane.xlu0 %52 }
  0xa2   :  { %v55_v19 = vmul.f32 0.00390625, %v53_v18 }
  0xa4   :  { %v75_v21 = vrot.slane %v55_v19, %v70_v16 }
  0xa6   :  { %v77_v22 = vsel %vm76_vm2, %v75_v21, %v71_v20 }
  0xa7   :  { %321 = vmatmul.mubr.msk.f32.vlgmr.msra.gmra.mxu0 %vm78_vm3, %v77_v22 }
 0x167   :  { %v150_v25 = vpop.f32.mrf.mxu0 }
 0x168   :  { %v151_v26 = vadd.f32 %v306_v24, %v150_v25 }
 0x169   :  { %v322_v27 = vpop.f32.mrf.mxu0 }
 0x16a   :  { %v309_v28 = vmul.f32 -1.442695, %v151_v26 }
 0x16c   :  { %337 = vpow2.f32 %v309_v28 }
 0x179   :  { %v338_v29 = vpop.eup %337 }
 0x17a   :  { %v157_v30 = vadd.f32 1.0, %v338_v29 }
 0x17c   :  { %339 = vrcp.f32 %v157_v30 }
 0x189   :  { %v340_v31 = vpop.eup %339 }
 0x18a   :  { %v160_v32 = vmul.f32 %v340_v31, %v151_v26 }
 0x18c   :  { %326 = vmatmul.mubr.msk.f32.vlgmr.msra.gmra.mxu1 %vm169_vm5, %v160_v32 }
 0x24c   :  { %v243_v34 = vpop.f32.mrf.mxu1 }
 0x24d   :  { %v244_v35 = vadd.f32 %v310_v33, %v243_v34 }
 0x24e   :  { %v327_v36 = vpop.f32.mrf.mxu1 }
 0x24f   :  { %v313_v37 = vmul.f32 -1.442695, %v244_v35 }
 0x251   :  { %341 = vpow2.f32 %v313_v37 }
 0x25e   :  { %v342_v38 = vpop.eup %341 }
 0x25f   :  { %v250_v39 = vadd.f32 1.0, %v342_v38 }
 0x261   :  { %343 = vrcp.f32 %v250_v39 }
 0x26e   :  { %v344_v41 = vpop.eup %343 }
 0x26f   :  { %v256_v42 = vrot.slane %v344_v41, %v255_v40  ;;  %v263_v44 = vrot.slane %v344_v41, %v262_v43 }
 0x271   :  { %258 = vbcast.lane.b32.xlu1 %v256_v42, 256 }
 0x275   :  { %265 = vbcast.lane.b32.xlu1 %v263_v44, 256 }
 0x2e3   :  { %v259_v49 = vpop.permute.xlu1 %258 }
 0x2e4   :  { %v275_v50 = vrot.slane %v259_v49, %v274_v48 }
 0x2e6   :  { %v285_v51 = vmul.f32 %v275_v50, %v432_v0 }
 0x2e7   :  { %v266_v52 = vpop.permute.xlu1 %265 }
 0x2e8   :  { %287 = vst [vmem:[#allocation5] sm:$0xff] %v285_v51  ;;  %v282_v53 = vrot.slane %v266_v52, %v274_v48 }
 0x2ea   :  { %v286_v54 = vmul.f32 %v282_v53, %v434_v1 }
 0x2ec   :  { %288 = vst [vmem:[#allocation5 + $0x8] sm:$0xff] %v286_v54 }
 0x2ed   :  { %376 = shalt.err (!%p373_p9)
}
 0x2ee   :  { %300 = dma.vmem_to_hbm [thread:$0]  %s295_s4, 256, %s472_s5, [#allocation4], %s390_s21, %s390_s21, %s391_s22  }
 0x2ef   :  { %387 = dma.done.wait [#allocation4], 256  }
 0x2f0   :  { %388 = vsyncadd [#allocation4], 4294967040 }
 0x2f1   :  { %304 = vsyncpa [#allocation3], 1 }
 0x2f2   :  { %305 = vsyncpa [#allocation4], 1 }

</bundles_post_ra>
